<compile_context>
chip_gen: v5e
topology: v5e:2x2
jax: 0.10.0
libtpu: 0.0.40
codegen_flags: <defaults>
</compile_context>

<pallas_src>
import jax
import jax.numpy as jnp
from jax import lax
from jax.experimental import pallas as pl
from jax.experimental.pallas import tpu as pltpu


def _attn_kernel(xq_ref, xkv_ref, wq_ref, bq_ref, wk_ref, bk_ref,
                 wv_ref, bv_ref, gamma_ref, o_ref,
                 q_sc, m_sc, l_sc, acc_sc):
    ki = pl.program_id(2)

    x_kv = xkv_ref[0].astype(jnp.bfloat16)                  # (C, tk)

    @pl.when(ki == 0)
    def _init():
        # New (batch, query-tile): project queries once, reset softmax state.
        x_q = xq_ref[0].astype(jnp.bfloat16)                # (C, tq)
        q = lax.dot_general(
            wq_ref[...], x_q, (((1,), (0,)), ((), ())),
            preferred_element_type=jnp.float32) + bq_ref[...]
        q_sc[...] = q.astype(jnp.bfloat16)                  # (C8, tq)
        m_sc[...] = jnp.full_like(m_sc, -jnp.inf)
        l_sc[...] = jnp.zeros_like(l_sc)
        acc_sc[...] = jnp.zeros_like(acc_sc)

    # key projection for this kv tile: k = Wk x_kv + bk  -> (C8, tk)
    k = (lax.dot_general(
        wk_ref[...], x_kv, (((1,), (0,)), ((), ())),
        preferred_element_type=jnp.float32) + bk_ref[...]).astype(jnp.bfloat16)

    # scores with keys on sublanes, queries on lanes: s[j, i] = k_j . q_i
    # (softmax reduces over sublanes; all online-softmax carries broadcast
    #  along lanes -> no transposes anywhere)
    s = lax.dot_general(
        k, q_sc[...], (((0,), (0,)), ((), ())),
        preferred_element_type=jnp.float32)                 # (tk, tq)

    # --- online softmax over the key axis (axis 0) ---
    m_new = jnp.maximum(m_sc[...], jnp.max(s, axis=0, keepdims=True))   # (1, tq)
    alpha = jnp.exp(m_sc[...] - m_new)
    p = jnp.exp(s - m_new)                                              # (tk, tq)
    l_sc[...] = alpha * l_sc[...] + jnp.sum(p, axis=0, keepdims=True)
    m_sc[...] = m_new

    # value projection for this kv tile: v = Wv x_kv + bv  -> (C, tk)
    v = (lax.dot_general(
        wv_ref[...], x_kv, (((1,), (0,)), ((), ())),
        preferred_element_type=jnp.float32) + bv_ref[...]).astype(jnp.bfloat16)

    # acc[c, i] += sum_j v[c, j] * p[j, i]   -> (C, tq), lane-dense
    acc_sc[...] = alpha * acc_sc[...] + lax.dot_general(
        v, p.astype(jnp.bfloat16), (((1,), (0,)), ((), ())),
        preferred_element_type=jnp.float32)

    @pl.when(ki == pl.num_programs(2) - 1)
    def _finalize():
        out = acc_sc[...] * pl.reciprocal(l_sc[...], approx=True)       # (C, tq)
        o_ref[0] = gamma_ref[0, 0] * out + xq_ref[0]


def _pick_tile(n, pref):
    """Largest multiple of 128 that divides n and is <= pref; else n (full)."""
    if n <= pref or n % 128 != 0:
        return n
    t = (min(pref, n) // 128) * 128
    while t > 128 and n % t != 0:
        t -= 128
    return t


def attention_block2(x, wq, bq, wk, bk, wv, bv, gamma, *, tq=None, tk=None):
    """x: (B, C, H, W) f32.

    Weights use the PyTorch Conv2d(kernel_size=1) convention:
      wq, wk: (C//8, C)   bq, bk: (C//8,)
      wv    : (C, C)      bv    : (C,)
      gamma : (1,)
    """
    B, C, H, W = x.shape
    C8 = wq.shape[0]
    N = H * W
    x_cn = x.reshape(B, C, N)                     # free reshape, no transpose

    if tq is None:
        tq = _pick_tile(N, 256)
    if tk is None:
        tk = _pick_tile(N, 512)
    assert N % tq == 0 and N % tk == 0, "tile sizes must divide H*W"

    wq_bf = wq.astype(jnp.bfloat16)                          # (C8, C)
    wk_bf = wk.astype(jnp.bfloat16)                          # (C8, C)
    wv_bf = wv.astype(jnp.bfloat16)                          # (C,  C)
    bq_col = bq.reshape(C8, 1).astype(jnp.float32)
    bk_col = bk.reshape(C8, 1).astype(jnp.float32)
    bv_col = bv.reshape(C, 1).astype(jnp.float32)
    gamma2d = gamma.reshape(1, 1).astype(jnp.float32)        # SMEM scalar

    grid = (B, N // tq, N // tk)

    out = pl.pallas_call(
        _attn_kernel,
        out_shape=jax.ShapeDtypeStruct((B, C, N), jnp.float32),
        grid_spec=pltpu.PrefetchScalarGridSpec(
            num_scalar_prefetch=0,
            grid=grid,
            in_specs=[
                pl.BlockSpec((1, C, tq), lambda b, qi, ki: (b, 0, qi)),  # x (query tiles)
                pl.BlockSpec((1, C, tk), lambda b, qi, ki: (b, 0, ki)),  # x (kv tiles)
                pl.BlockSpec((C8, C), lambda b, qi, ki: (0, 0)),         # Wq
                pl.BlockSpec((C8, 1), lambda b, qi, ki: (0, 0)),         # bq
                pl.BlockSpec((C8, C), lambda b, qi, ki: (0, 0)),         # Wk
                pl.BlockSpec((C8, 1), lambda b, qi, ki: (0, 0)),         # bk
                pl.BlockSpec((C, C), lambda b, qi, ki: (0, 0)),          # Wv
                pl.BlockSpec((C, 1), lambda b, qi, ki: (0, 0)),          # bv
                pl.BlockSpec(memory_space=pltpu.MemorySpace.SMEM),       # gamma
            ],
            out_specs=pl.BlockSpec((1, C, tq), lambda b, qi, ki: (b, 0, qi)),
            scratch_shapes=[
                pltpu.VMEM((C8, tq), jnp.bfloat16),  # cached query projection
                pltpu.VMEM((1, tq), jnp.float32),    # running max  m
                pltpu.VMEM((1, tq), jnp.float32),    # running sum  l
                pltpu.VMEM((C, tq), jnp.float32),    # output accumulator
            ],
        ),
        compiler_params=pltpu.CompilerParams(
            dimension_semantics=("parallel", "parallel", "arbitrary")),
    )(x_cn, x_cn, wq_bf, bq_col, wk_bf, bk_col, wv_bf, bv_col, gamma2d)

    return out.reshape(B, C, H, W)


def _reference(x, wq, bq, wk, bk, wv, bv, gamma):
    """Pure-JAX f32 reference, literal translation of the PyTorch forward."""
    B, C, H, W = x.shape
    N = H * W
    hi = lax.Precision.HIGHEST
    xf = x.reshape(B, C, N)                                            # (B, C, N)
    q = jnp.einsum("oc,bcn->bon", wq, xf, precision=hi) + bq[None, :, None]
    k = jnp.einsum("oc,bcn->bon", wk, xf, precision=hi) + bk[None, :, None]
    v = jnp.einsum("oc,bcn->bon", wv, xf, precision=hi) + bv[None, :, None]
    attn = jax.nn.softmax(jnp.einsum("bci,bcj->bij", q, k, precision=hi), axis=-1)
    out = jnp.einsum("bcj,bij->bci", v, attn, precision=hi)            # (B, C, N)
    y = gamma.reshape(()) * out + xf
    return y.reshape(B, C, H, W)


if __name__ == "__main__":
    key = jax.random.PRNGKey(0)
    B, C, H, W = 2, 16, 16, 16          # N = 256 -> exercises multi-tile flash loop
    Cq = C // 8

    ks = jax.random.split(key, 8)
    x = jax.random.normal(ks[0], (B, C, H, W), dtype=jnp.float32)
    wq = jax.random.normal(ks[1], (Cq, C), dtype=jnp.float32) * 0.1
    bq = jax.random.normal(ks[2], (Cq,), dtype=jnp.float32) * 0.1
    wk = jax.random.normal(ks[3], (Cq, C), dtype=jnp.float32) * 0.1
    bk = jax.random.normal(ks[4], (Cq,), dtype=jnp.float32) * 0.1
    wv = jax.random.normal(ks[5], (C, C), dtype=jnp.float32) * 0.1
    bv = jax.random.normal(ks[6], (C,), dtype=jnp.float32) * 0.1
    # nn.Parameter(torch.zeros(1)) in the module; nonzero here so the
    # attention path is actually exercised.
    gamma = jnp.full((1,), 0.5, dtype=jnp.float32)

    # tq=tk=128 forces a (2, 2, 2) grid so the online-softmax accumulation
    # across kv tiles (and the cached-query path) is exercised.
    y = attention_block2(x, wq, bq, wk, bk, wv, bv, gamma, tq=128, tk=128)
    y = jax.block_until_ready(y)

    y_ref = _reference(x, wq, bq, wk, bk, wv, bv, gamma)
    assert y.shape == (B, C, H, W)
    max_err = float(jnp.max(jnp.abs(y - y_ref)))
    # bf16 matmul operands (f32 accumulation) -> slightly looser tolerance.
    assert jnp.allclose(y, y_ref, atol=2e-2, rtol=2e-2), (
        f"mismatch vs reference, max abs err={max_err}")

    print("KERNEL_OK")
</pallas_src>

<mosaic_0001>
module attributes {stable_mosaic.version = 11 : i64} {
  func.func @_attn_kernel(%arg0: i32, %arg1: i32, %arg2: i32, %arg3: memref<1x16x128xf32, #tpu.memory_space<vmem>>, %arg4: memref<1x16x128xf32, #tpu.memory_space<vmem>>, %arg5: memref<2x16xbf16, #tpu.memory_space<vmem>>, %arg6: memref<2x1xf32, #tpu.memory_space<vmem>>, %arg7: memref<2x16xbf16, #tpu.memory_space<vmem>>, %arg8: memref<2x1xf32, #tpu.memory_space<vmem>>, %arg9: memref<16x16xbf16, #tpu.memory_space<vmem>>, %arg10: memref<16x1xf32, #tpu.memory_space<vmem>>, %arg11: memref<1x1xf32, #tpu.memory_space<smem>>, %arg12: memref<1x16x128xf32, #tpu.memory_space<vmem>>, %arg13: memref<2x128xbf16, #tpu.memory_space<vmem>>, %arg14: memref<1x128xf32, #tpu.memory_space<vmem>>, %arg15: memref<1x128xf32, #tpu.memory_space<vmem>>, %arg16: memref<16x128xf32, #tpu.memory_space<vmem>>) attributes {dimension_semantics = [#tpu.dimension_semantics<parallel>, #tpu.dimension_semantics<parallel>, #tpu.dimension_semantics<arbitrary>], iteration_bounds = array<i64: 2, 2, 2>, scalar_prefetch = 0 : i64, scratch_operands = 4 : i64, tpu.core_type = #tpu.core_type<tc>, window_params = [{transform_indices = @transform_0, window_bounds = array<i64: 1, 16, 128>}, {transform_indices = @transform_1, window_bounds = array<i64: 1, 16, 128>}, {pipeline_mode = #tpu.pipeline_mode<synchronous>, transform_indices = @transform_2, window_bounds = array<i64: 2, 16>}, {pipeline_mode = #tpu.pipeline_mode<synchronous>, transform_indices = @transform_3, window_bounds = array<i64: 2, 1>}, {pipeline_mode = #tpu.pipeline_mode<synchronous>, transform_indices = @transform_4, window_bounds = array<i64: 2, 16>}, {pipeline_mode = #tpu.pipeline_mode<synchronous>, transform_indices = @transform_5, window_bounds = array<i64: 2, 1>}, {pipeline_mode = #tpu.pipeline_mode<synchronous>, transform_indices = @transform_6, window_bounds = array<i64: 16, 16>}, {pipeline_mode = #tpu.pipeline_mode<synchronous>, transform_indices = @transform_7, window_bounds = array<i64: 16, 1>}, {transform_indices = @transform_8, window_bounds = array<i64: 1, 1>}, {transform_indices = @transform_9, window_bounds = array<i64: 1, 16, 128>}]} {
    %c0 = arith.constant 0 : index
    %c0_0 = arith.constant 0 : index
    %c0_1 = arith.constant 0 : index
    %0 = vector.load %arg4[%c0, %c0_0, %c0_1] : memref<1x16x128xf32, #tpu.memory_space<vmem>>, vector<1x16x128xf32>
    %1 = vector.shape_cast %0 : vector<1x16x128xf32> to vector<16x128xf32>
    %2 = arith.truncf %1 : vector<16x128xf32> to vector<16x128xbf16>
    %c0_i32 = arith.constant 0 : i32
    %3 = arith.cmpi eq, %arg2, %c0_i32 : i32
    %4 = arith.extui %3 : i1 to i32
    %c0_i32_2 = arith.constant 0 : i32
    %5 = arith.cmpi ne, %4, %c0_i32_2 : i32
    scf.if %5 {
      %c0_33 = arith.constant 0 : index
      %c0_34 = arith.constant 0 : index
      %c0_35 = arith.constant 0 : index
      %47 = vector.load %arg3[%c0_33, %c0_34, %c0_35] : memref<1x16x128xf32, #tpu.memory_space<vmem>>, vector<1x16x128xf32>
      %48 = vector.shape_cast %47 : vector<1x16x128xf32> to vector<16x128xf32>
      %49 = arith.truncf %48 : vector<16x128xf32> to vector<16x128xbf16>
      %c0_36 = arith.constant 0 : index
      %c0_37 = arith.constant 0 : index
      %50 = vector.load %arg5[%c0_36, %c0_37] : memref<2x16xbf16, #tpu.memory_space<vmem>>, vector<2x16xbf16>
      %cst_38 = arith.constant dense<0.000000e+00> : vector<2x128xf32>
      %51 = tpu.matmul %50, %49, %cst_38 {dimension_numbers = #tpu.dot_dimension_numbers<[1], [0], [0], [1], [0, 0, 1, 1], [], []>} : vector<2x16xbf16>, vector<16x128xbf16>, vector<2x128xf32> -> vector<2x128xf32>
      %c0_39 = arith.constant 0 : index
      %c0_40 = arith.constant 0 : index
      %52 = vector.load %arg6[%c0_39, %c0_40] : memref<2x1xf32, #tpu.memory_space<vmem>>, vector<2x1xf32>
      %53 = vector.broadcast %52 : vector<2x1xf32> to vector<2x128xf32>
      %54 = arith.addf %51, %53 : vector<2x128xf32>
      %55 = arith.truncf %54 : vector<2x128xf32> to vector<2x128xbf16>
      %c0_41 = arith.constant 0 : index
      %c0_42 = arith.constant 0 : index
      %56 = vector.load %arg13[%c0_41, %c0_42] : memref<2x128xbf16, #tpu.memory_space<vmem>>, vector<2x128xbf16>
      tpu.vector_store %arg13[%c0_41, %c0_42], %55 {strides = array<i32>} : memref<2x128xbf16, #tpu.memory_space<vmem>>, vector<2x128xbf16>,
      %cst_43 = arith.constant 0xFF800000 : f32
      %57 = vector.broadcast %cst_43 : f32 to vector<1x128xf32>
      %c0_44 = arith.constant 0 : index
      %c0_45 = arith.constant 0 : index
      %58 = vector.load %arg14[%c0_44, %c0_45] : memref<1x128xf32, #tpu.memory_space<vmem>>, vector<1x128xf32>
      tpu.vector_store %arg14[%c0_44, %c0_45], %57 {strides = array<i32>} : memref<1x128xf32, #tpu.memory_space<vmem>>, vector<1x128xf32>,
      %cst_46 = arith.constant 0.000000e+00 : f32
      %59 = vector.broadcast %cst_46 : f32 to vector<1x128xf32>
      %c0_47 = arith.constant 0 : index
      %c0_48 = arith.constant 0 : index
      %60 = vector.load %arg15[%c0_47, %c0_48] : memref<1x128xf32, #tpu.memory_space<vmem>>, vector<1x128xf32>
      tpu.vector_store %arg15[%c0_47, %c0_48], %59 {strides = array<i32>} : memref<1x128xf32, #tpu.memory_space<vmem>>, vector<1x128xf32>,
      %cst_49 = arith.constant 0.000000e+00 : f32
      %61 = vector.broadcast %cst_49 : f32 to vector<16x128xf32>
      %c0_50 = arith.constant 0 : index
      %c0_51 = arith.constant 0 : index
      %62 = vector.load %arg16[%c0_50, %c0_51] : memref<16x128xf32, #tpu.memory_space<vmem>>, vector<16x128xf32>
      tpu.vector_store %arg16[%c0_50, %c0_51], %61 {strides = array<i32>} : memref<16x128xf32, #tpu.memory_space<vmem>>, vector<16x128xf32>,
    } else {
    }
    %c0_3 = arith.constant 0 : index
    %c0_4 = arith.constant 0 : index
    %6 = vector.load %arg7[%c0_3, %c0_4] : memref<2x16xbf16, #tpu.memory_space<vmem>>, vector<2x16xbf16>
    %cst = arith.constant dense<0.000000e+00> : vector<2x128xf32>
    %7 = tpu.matmul %6, %2, %cst {dimension_numbers = #tpu.dot_dimension_numbers<[1], [0], [0], [1], [0, 0, 1, 1], [], []>} : vector<2x16xbf16>, vector<16x128xbf16>, vector<2x128xf32> -> vector<2x128xf32>
    %c0_5 = arith.constant 0 : index
    %c0_6 = arith.constant 0 : index
    %8 = vector.load %arg8[%c0_5, %c0_6] : memref<2x1xf32, #tpu.memory_space<vmem>>, vector<2x1xf32>
    %9 = vector.broadcast %8 : vector<2x1xf32> to vector<2x128xf32>
    %10 = arith.addf %7, %9 : vector<2x128xf32>
    %11 = arith.truncf %10 : vector<2x128xf32> to vector<2x128xbf16>
    %c0_7 = arith.constant 0 : index
    %c0_8 = arith.constant 0 : index
    %12 = vector.load %arg13[%c0_7, %c0_8] : memref<2x128xbf16, #tpu.memory_space<vmem>>, vector<2x128xbf16>
    %cst_9 = arith.constant dense<0.000000e+00> : vector<128x128xf32>
    %13 = tpu.matmul %11, %12, %cst_9 {dimension_numbers = #tpu.dot_dimension_numbers<[0], [0], [1], [1], [0, 1, 1, 1], [], []>} : vector<2x128xbf16>, vector<2x128xbf16>, vector<128x128xf32> -> vector<128x128xf32>
    %c0_10 = arith.constant 0 : index
    %c0_11 = arith.constant 0 : index
    %14 = vector.load %arg14[%c0_10, %c0_11] : memref<1x128xf32, #tpu.memory_space<vmem>>, vector<1x128xf32>
    %cst_12 = arith.constant dense<0xFF800000> : vector<128xf32>
    %15 = vector.multi_reduction <maximumf>, %13, %cst_12 [0] : vector<128x128xf32> to vector<128xf32>
    %16 = vector.shape_cast %15 : vector<128xf32> to vector<1x128xf32>
    %17 = arith.maximumf %14, %16 : vector<1x128xf32>
    %c0_13 = arith.constant 0 : index
    %c0_14 = arith.constant 0 : index
    %18 = vector.load %arg14[%c0_13, %c0_14] : memref<1x128xf32, #tpu.memory_space<vmem>>, vector<1x128xf32>
    %19 = arith.subf %18, %17 : vector<1x128xf32>
    %20 = math.exp %19 : vector<1x128xf32>
    %21 = vector.broadcast %17 : vector<1x128xf32> to vector<128x128xf32>
    %22 = arith.subf %13, %21 : vector<128x128xf32>
    %23 = math.exp %22 : vector<128x128xf32>
    %c0_15 = arith.constant 0 : index
    %c0_16 = arith.constant 0 : index
    %24 = vector.load %arg15[%c0_15, %c0_16] : memref<1x128xf32, #tpu.memory_space<vmem>>, vector<1x128xf32>
    %25 = arith.mulf %20, %24 : vector<1x128xf32>
    %cst_17 = arith.constant dense<0.000000e+00> : vector<128xf32>
    %26 = vector.multi_reduction <add>, %23, %cst_17 [0] : vector<128x128xf32> to vector<128xf32>
    %27 = vector.shape_cast %26 : vector<128xf32> to vector<1x128xf32>
    %28 = arith.addf %25, %27 : vector<1x128xf32>
    %c0_18 = arith.constant 0 : index
    %c0_19 = arith.constant 0 : index
    %29 = vector.load %arg15[%c0_18, %c0_19] : memref<1x128xf32, #tpu.memory_space<vmem>>, vector<1x128xf32>
    tpu.vector_store %arg15[%c0_18, %c0_19], %28 {strides = array<i32>} : memref<1x128xf32, #tpu.memory_space<vmem>>, vector<1x128xf32>,
    %c0_20 = arith.constant 0 : index
    %c0_21 = arith.constant 0 : index
    %30 = vector.load %arg14[%c0_20, %c0_21] : memref<1x128xf32, #tpu.memory_space<vmem>>, vector<1x128xf32>
    tpu.vector_store %arg14[%c0_20, %c0_21], %17 {strides = array<i32>} : memref<1x128xf32, #tpu.memory_space<vmem>>, vector<1x128xf32>,
    %c0_22 = arith.constant 0 : index
    %c0_23 = arith.constant 0 : index
    %31 = vector.load %arg9[%c0_22, %c0_23] : memref<16x16xbf16, #tpu.memory_space<vmem>>, vector<16x16xbf16>
    %cst_24 = arith.constant dense<0.000000e+00> : vector<16x128xf32>
    %32 = tpu.matmul %31, %2, %cst_24 {dimension_numbers = #tpu.dot_dimension_numbers<[1], [0], [0], [1], [0, 0, 1, 1], [], []>} : vector<16x16xbf16>, vector<16x128xbf16>, vector<16x128xf32> -> vector<16x128xf32>
    %c0_25 = arith.constant 0 : index
    %c0_26 = arith.constant 0 : index
    %33 = vector.load %arg10[%c0_25, %c0_26] : memref<16x1xf32, #tpu.memory_space<vmem>>, vector<16x1xf32>
    %34 = vector.broadcast %33 : vector<16x1xf32> to vector<16x128xf32>
    %35 = arith.addf %32, %34 : vector<16x128xf32>
    %36 = arith.truncf %35 : vector<16x128xf32> to vector<16x128xbf16>
    %c0_27 = arith.constant 0 : index
    %c0_28 = arith.constant 0 : index
    %37 = vector.load %arg16[%c0_27, %c0_28] : memref<16x128xf32, #tpu.memory_space<vmem>>, vector<16x128xf32>
    %38 = vector.broadcast %20 : vector<1x128xf32> to vector<16x128xf32>
    %39 = arith.mulf %38, %37 : vector<16x128xf32>
    %40 = arith.truncf %23 : vector<128x128xf32> to vector<128x128xbf16>
    %cst_29 = arith.constant dense<0.000000e+00> : vector<16x128xf32>
    %41 = tpu.matmul %36, %40, %cst_29 {dimension_numbers = #tpu.dot_dimension_numbers<[1], [0], [0], [1], [0, 0, 1, 1], [], []>} : vector<16x128xbf16>, vector<128x128xbf16>, vector<16x128xf32> -> vector<16x128xf32>
    %42 = arith.addf %39, %41 : vector<16x128xf32>
    %c0_30 = arith.constant 0 : index
    %c0_31 = arith.constant 0 : index
    %43 = vector.load %arg16[%c0_30, %c0_31] : memref<16x128xf32, #tpu.memory_space<vmem>>, vector<16x128xf32>
    tpu.vector_store %arg16[%c0_30, %c0_31], %42 {strides = array<i32>} : memref<16x128xf32, #tpu.memory_space<vmem>>, vector<16x128xf32>,
    %c1_i32 = arith.constant 1 : i32
    %44 = arith.cmpi eq, %arg2, %c1_i32 : i32
    %45 = arith.extui %44 : i1 to i32
    %c0_i32_32 = arith.constant 0 : i32
    %46 = arith.cmpi ne, %45, %c0_i32_32 : i32
    scf.if %46 {
      %c0_33 = arith.constant 0 : index
      %c0_34 = arith.constant 0 : index
      %47 = vector.load %arg16[%c0_33, %c0_34] : memref<16x128xf32, #tpu.memory_space<vmem>>, vector<16x128xf32>
      %c0_35 = arith.constant 0 : index
      %c0_36 = arith.constant 0 : index
      %48 = vector.load %arg15[%c0_35, %c0_36] : memref<1x128xf32, #tpu.memory_space<vmem>>, vector<1x128xf32>
      %49 = tpu.reciprocal %48 {approx = true} : vector<1x128xf32> -> vector<1x128xf32>
      %50 = vector.broadcast %49 : vector<1x128xf32> to vector<16x128xf32>
      %51 = arith.mulf %47, %50 : vector<16x128xf32>
      %c0_37 = arith.constant 0 : index
      %c0_38 = arith.constant 0 : index
      %52 = memref.load %arg11[%c0_37, %c0_38] : memref<1x1xf32, #tpu.memory_space<smem>>
      %53 = vector.broadcast %52 : f32 to vector<16x128xf32>
      %54 = arith.mulf %53, %51 : vector<16x128xf32>
      %c0_39 = arith.constant 0 : index
      %c0_40 = arith.constant 0 : index
      %c0_41 = arith.constant 0 : index
      %55 = vector.load %arg3[%c0_39, %c0_40, %c0_41] : memref<1x16x128xf32, #tpu.memory_space<vmem>>, vector<1x16x128xf32>
      %56 = vector.shape_cast %55 : vector<1x16x128xf32> to vector<16x128xf32>
      %57 = arith.addf %54, %56 : vector<16x128xf32>
      %c0_42 = arith.constant 0 : index
      %c0_43 = arith.constant 0 : index
      %c0_44 = arith.constant 0 : index
      %58 = vector.load %arg12[%c0_42, %c0_43, %c0_44] : memref<1x16x128xf32, #tpu.memory_space<vmem>>, vector<1x16x128xf32>
      %59 = vector.shape_cast %58 : vector<1x16x128xf32> to vector<16x128xf32>
      %60 = vector.shape_cast %57 : vector<16x128xf32> to vector<1x16x128xf32>
      tpu.vector_store %arg12[%c0_42, %c0_43, %c0_44], %60 {strides = array<i32>} : memref<1x16x128xf32, #tpu.memory_space<vmem>>, vector<1x16x128xf32>,
    } else {
    }
    return
  }
  func.func @transform_0(%arg0: i32, %arg1: i32, %arg2: i32) -> (i32, i32, i32) {
    %c0_i32 = arith.constant 0 : i32
    %c0_i32_0 = arith.constant 0 : i32
    return %arg0, %c0_i32, %arg1 : i32, i32, i32
  }
  func.func @transform_1(%arg0: i32, %arg1: i32, %arg2: i32) -> (i32, i32, i32) {
    %c0_i32 = arith.constant 0 : i32
    %c0_i32_0 = arith.constant 0 : i32
    return %arg0, %c0_i32, %arg2 : i32, i32, i32
  }
  func.func @transform_2(%arg0: i32, %arg1: i32, %arg2: i32) -> (i32, i32) {
    %c0_i32 = arith.constant 0 : i32
    %c0_i32_0 = arith.constant 0 : i32
    %c0_i32_1 = arith.constant 0 : i32
    return %c0_i32, %c0_i32_0 : i32, i32
  }
  func.func @transform_3(%arg0: i32, %arg1: i32, %arg2: i32) -> (i32, i32) {
    %c0_i32 = arith.constant 0 : i32
    %c0_i32_0 = arith.constant 0 : i32
    %c0_i32_1 = arith.constant 0 : i32
    return %c0_i32, %c0_i32_0 : i32, i32
  }
  func.func @transform_4(%arg0: i32, %arg1: i32, %arg2: i32) -> (i32, i32) {
    %c0_i32 = arith.constant 0 : i32
    %c0_i32_0 = arith.constant 0 : i32
    %c0_i32_1 = arith.constant 0 : i32
    return %c0_i32, %c0_i32_0 : i32, i32
  }
  func.func @transform_5(%arg0: i32, %arg1: i32, %arg2: i32) -> (i32, i32) {
    %c0_i32 = arith.constant 0 : i32
    %c0_i32_0 = arith.constant 0 : i32
    %c0_i32_1 = arith.constant 0 : i32
    return %c0_i32, %c0_i32_0 : i32, i32
  }
  func.func @transform_6(%arg0: i32, %arg1: i32, %arg2: i32) -> (i32, i32) {
    %c0_i32 = arith.constant 0 : i32
    %c0_i32_0 = arith.constant 0 : i32
    %c0_i32_1 = arith.constant 0 : i32
    return %c0_i32, %c0_i32_0 : i32, i32
  }
  func.func @transform_7(%arg0: i32, %arg1: i32, %arg2: i32) -> (i32, i32) {
    %c0_i32 = arith.constant 0 : i32
    %c0_i32_0 = arith.constant 0 : i32
    %c0_i32_1 = arith.constant 0 : i32
    return %c0_i32, %c0_i32_0 : i32, i32
  }
  func.func @transform_8(%arg0: i32, %arg1: i32, %arg2: i32) -> (i32, i32) {
    %c0_i32 = arith.constant 0 : i32
    %c0_i32_0 = arith.constant 0 : i32
    %c0_i32_1 = arith.constant 0 : i32
    return %c0_i32, %c0_i32_0 : i32, i32
  }
  func.func @transform_9(%arg0: i32, %arg1: i32, %arg2: i32) -> (i32, i32, i32) {
    %c0_i32 = arith.constant 0 : i32
    %c0_i32_0 = arith.constant 0 : i32
    return %arg0, %c0_i32, %arg1 : i32, i32, i32
  }
}

</mosaic_0001>

<bundles_post_ra>
// kernel: tpu_custom_call.1
= control target key start
LH: loop header
LB: loop body
LE: loop exit
PB: predicated region body
PF: predicated region fallthrough
CT: control target
= control target key end

     0   :  { %s1755_s0 = inlined_call_operand.hbm [shape: f32[2,16,256], index: 0, kind: input, shape index: {}]   ;;  %s1756_s1 = inlined_call_operand.hbm [shape: f32[2,16,256], index: 1, kind: input, shape index: {}]   ;;  %s1757_s2 = inlined_call_operand.vmem [shape: bf16[2,16], index: 2, kind: input, shape index: {}]   ;;  %s1758_s3 = inlined_call_operand.vmem [shape: f32[2,1], index: 3, kind: input, shape index: {}]   ;;  %s1759_s4 = inlined_call_operand.vmem [shape: bf16[2,16], index: 4, kind: input, shape index: {}]   ;;  %s1760_s5 = inlined_call_operand.vmem [shape: f32[2,1], index: 5, kind: input, shape index: {}]   ;;  %s1761_s6 = inlined_call_operand.vmem [shape: bf16[16,16], index: 6, kind: input, shape index: {}]   ;;  %s1762_s7 = inlined_call_operand.vmem [shape: f32[16,1], index: 7, kind: input, shape index: {}]   ;;  %s1763_s8 = inlined_call_operand.<no memory space> [shape: f32[1,1], index: 8, kind: input, shape index: {}]   ;;  %s1764_s9 = inlined_call_operand.hbm [shape: f32[2,16,256], index: 9, kind: output, shape index: {}]  }
   0x1   :  { %1779 = sst [smem:[#allocation25_spill]] %s1755_s0 }
   0x2   :  { %1780 = sst [smem:[#allocation26_spill]] %s1757_s2 }
   0x3   :  { %1781 = sst [smem:[#allocation27_spill]] %s1758_s3 }
   0x4   :  { %1782 = sst [smem:[#allocation28_spill]] %s1759_s4 }
   0x5   :  { %1783 = sst [smem:[#allocation29_spill]] %s1760_s5 }
   0x6   :  { %1784 = sst [smem:[#allocation30_spill]] %s1761_s6 }
   0x7   :  { %1785 = sst [smem:[#allocation31_spill]] %s1762_s7 }
   0x8   :  { %1786 = sst [smem:[#allocation32_spill]] %s1764_s9 }
   0x9   :  { %14 = sst [smem:[#allocation6]] %s1763_s8 }
   0xa   :  { %15 = vsyncpa [#allocation8], 0 }
   0xb   :  { %17 = vsyncpa [#allocation8 + $0x1], 0 }
   0xc   :  { %18 = vsyncpa [#allocation11], 0 }
   0xd   :  { %20 = vsyncpa [#allocation11 + $0x1], 0 }
   0xe   :  { %21 = vsyncpa [#allocation9], 0 }
   0xf   :  { %23 = vsyncpa [#allocation9 + $0x1], 0  ;;  %s1393_s11 = smov 0   ;;  %s1395_s12 = smov 0  }
  0x10   :  { %s1397_s13 = smov 0   ;;  %s1399_s14 = smov 0  }
  0x11   :  { %s1401_s15 = smov 0   ;;  %s1403_s16 = smov 0  }
  0x12   :  { %s1405_s17 = smov 0   ;;  %s1407_s8 = smov 0  }
  0x13   :  { %s1409_s18 = smov 0   ;;  %s1411_s19 = smov 0  }
  0x14   :  { %s1413_s20 = smov 0   ;;  %s1415_s21 = smov 0  }
  0x15   :  { %s1417_s22 = smov 0  }
  0x16 LB: > { %1787 = sst [smem:[#allocation16_spill]] %s1292_s14  ;;  %s916_s23 = sadd.s32 4294967295, %s1328_s22   ;;  %s1328_s22 = sphi %s1417_s22, %s29_s22   ;;  %s1324_s21 = sphi %s1415_s21, %s1841_s21   ;;  %s1320_s20 = sphi %s1413_s20, %s1830_s20   ;;  %s1316_s19 = sphi %s1411_s19, %s1840_s19   ;;  %s1312_s18 = sphi %s1409_s18, %s1839_s18   ;;  %s1308_s8 = sphi %s1407_s8, %s1828_s8   ;;  %s1304_s17 = sphi %s1405_s17, %s1827_s17   ;;  %s1300_s16 = sphi %s1403_s16, %s1838_s16   ;;  %s1296_s15 = sphi %s1401_s15, %s1837_s15   ;;  %s1292_s14 = sphi %s1399_s14, %s1836_s14   ;;  %s1288_s13 = sphi %s1397_s13, %s1835_s13   ;;  %s1284_s12 = sphi %s1395_s12, %s1834_s12   ;;  %s1280_s11 = sphi %s1393_s11, %s1833_s11  }
  0x17   : > { %1788 = sst [smem:[#allocation17_spill]] %s1308_s8  ;;  %s917_s24 = sadd.s32 4294967294, %s1328_s22  }
  0x18   : > { %1789 = sst [smem:[#allocation18_spill]] %s1312_s18  ;;  %p64_p0 = scmp.ne.s32.totalorder %s1300_s16, %s1296_s15 }
  0x19   : > { %1790 = sst [smem:[#allocation19_spill]] %s1316_s19  ;;  %p65_p1 = scmp.eq.s32.totalorder %s1328_s22, 0 }
  0x1a   : > { %1791 = sst [smem:[#allocation20_spill]] %s1320_s20  ;;  %p70_p2 = scmp.ne.s32.totalorder %s1296_s15, %s1292_s14 }
  0x1b   : > { %p1467_p3 = scmp.eq.s32.totalorder %s916_s23, 0  ;;  %p271_p4 = scmp.eq.s32.totalorder %s916_s23, 7 }
  0x1c   : > { %p1473_p5 = por %p65_p1, %p64_p0  ;;  %p277_p6 = scmp.eq.s32.totalorder %s917_s24, 7 }
  0x1d   : > { %p1479_p7 = por %p1467_p3, %p70_p2  ;;  %p1483_p8 = por %p271_p4, %p64_p0 }
  0x1e   : > { %p1487_p9 = por %p277_p6, %p70_p2  ;;  %p971_p10 = scmp.lt.s32.totalorder %s1328_s22, 8 }
  0x1f   : > { %s1795_s30 = scalar_select %p1483_p8, 1, 0 }
  0x20   : > { %s1797_s10 = scalar_select %p1487_p9, 1, 0 }
  0x21   : > { %1796 = sst [smem:[#allocation21_spill]] %s1795_s30  ;;  %s318_s23 = sand.u32 1, %s1300_s16  }
  0x22   : > { %1798 = sst [smem:[#allocation22_spill]] %s1797_s10  ;;  %s920_s26 = sshll.u32 %s318_s23, 4 }
  0x23   : > { %s1771_s25 = sshll.u32 %s1324_s21, 2  ;;  %s322_s14 = scalar_lea.vmem [#allocation7], %s920_s26 }
  0x24   : > { %s326_s24 = sadd.s32 %s1320_s20, %s1771_s25  ;;  %s331_s9 = sshll.u32 %s322_s14, 4  ;;  %s332_s9 = int_to_ptr.vmem [resolvable:$true] %s331_s9 }
  0x25   : > { %s922_s8 = sshll.u32 %s326_s24, 3  ;;  %s1799_s0 = sld [smem:[#allocation25_spill]] }
  0x26   : > { %p961_p11 = pnand %p971_p10, %p1473_p5  ;;  %s319_s26 = scalar_lea.sflag [#allocation8], %s318_s23 }
  0x27   : > { %s1772_s14 = smov 256   ;;  %s1773_s24 = smov 128  }
  0x28   : > { %s1774_s25 = smov 8   ;;  %p926_p12 = scmp.ge.s32.totalorder %s1328_s22, 1 }
  0x29   : > { %p362_p13 = scmp.lt.s32.totalorder %s1328_s22, 9  ;;  %s41_s18 = sadd.s32 1, %s1316_s19 }
  0x2a   : > { %p42_p2 = scmp.ge.s32.totalorder %s41_s18, 2  ;;  %p98_p4 = scmp.ne.s32.totalorder %s1284_s12, %s1280_s11 }
  0x2b   : > { %s328_s7 = scalar_lea.hbm %s1799_s0, %s922_s8  ;;  %p1510_p0 = pnand %p926_p12, %p362_p13 }
  0x2c   : > { %s329_s10 = sshll.u32 %s328_s7, 4  ;;  %s1843_s18 = smov (%p42_p2, %s41_s18), 0  ;;  %s330_s10 = int_to_ptr.hbm [resolvable:$true] %s329_s10 }
  0x2d   : > { %963 = dma.hbm_to_vmem [thread:$0]  (!%p961_p11), %s330_s10, 256, %s332_s9, %s319_s26, %s1772_s14, %s1773_s24, %s1774_s25  }
  0x2e   : > { %1801 = sst [smem:[#allocation23_spill]] %s1843_s18  ;;  %s1802_s9 = sadd.s32 1, %s1320_s20 }
  0x2f   : > { %s1845_s9 = smov (!%p42_p2, %s1802_s9), %s1320_s20  ;;  %s81_s30 = ssub.s32 %s1316_s19, %s1843_s18 }
  0x30   : > { %p92_p5 = scmp.ne.s32.totalorder %s1288_s13, %s1284_s12  ;;  %p46_p6 = scmp.ge.s32.totalorder %s1845_s9, 2 }
  0x31   : > { %p1529_p11 = por %p98_p4, %p1467_p3  ;;  %s341_s23 = sand.u32 1, %s1288_s13  }
  0x32   : > { %s1804_s26 = sshll.u32 %s1324_s21, 2  ;;  %s1847_s9 = smov (%p46_p6, %s1845_s9), 0 }
  0x33   : > { %s349_s14 = sadd.s32 %s1316_s19, %s1804_s26  ;;  %1805 = sst [smem:[#allocation24_spill]] %s1847_s9 }
  0x34   : > { %s1806_s11 = sadd.s32 1, %s1324_s21  ;;  %s53_s24 = ssub.s32 %s1320_s20, %s1847_s9 }
  0x35   : > { %s1849_s11 = smov (!%p46_p6, %s1806_s11), %s1324_s21  ;;  %p1546_p12 = por %p92_p5, %p65_p1 }
  0x36   : > { %p50_p3 = scmp.ge.s32.totalorder %s1849_s11, 2  ;;  %s923_s27 = sshll.u32 %s341_s23, 4 }
  0x37   : > { %s925_s26 = sshll.u32 %s349_s14, 3  ;;  %s345_s6 = scalar_lea.vmem [#allocation10], %s923_s27 }
  0x38   : > { %s1851_s11 = smov (%p50_p3, %s1849_s11), 0  ;;  %s351_s0 = scalar_lea.hbm %s1756_s1, %s925_s26 }
  0x39   : > { %s52_s9 = ssub.s32 %s1324_s21, %s1851_s11  ;;  %s352_s18 = sshll.u32 %s351_s0, 4  ;;  %s353_s18 = int_to_ptr.hbm [resolvable:$true] %s352_s18 }
  0x3a   : > { %s54_s20 = sor.u32 %s53_s24, %s52_s9  ;;  %s82_s19 = sor.u32 %s81_s30, %s52_s9 }
  0x3b   : > { %p55_p1 = scmp.eq.s32.totalorder %s54_s20, 0  ;;  %p83_p13 = scmp.eq.s32.totalorder %s82_s19, 0 }
  0x3c   : > { %s354_s5 = sshll.u32 %s345_s6, 4  ;;  %s1808_s4 = sadd.s32 1, %s1300_s16  ;;  %s355_s5 = int_to_ptr.vmem [resolvable:$true] %s354_s5 }
  0x3d   : > { %s1560_s2 = scalar_select %p55_p1, %s1300_s16, %s1808_s4  }
  0x3e   : > { %s1809_s14 = sadd.s32 1, %s1288_s13  ;;  %p964_p2 = pnand %p971_p10, %p1546_p12 }
  0x3f   : > { %s1565_s3 = scalar_select %p83_p13, %s1288_s13, %s1809_s14  }
  0x40   : > { %s342_s7 = scalar_lea.sflag [#allocation11], %s341_s23  ;;  %s1810_s28 = smov 8  }
  0x41   : > { %s1811_s0 = smov 128   ;;  %s1812_s24 = smov 256  }
  0x42   : > { %966 = dma.hbm_to_vmem [thread:$0]  (!%p964_p2), %s353_s18, 256, %s355_s5, %s342_s7, %s1812_s24, %s1811_s0, %s1810_s28  }
  0x43   : > { %366 = sbr.rel (%p1510_p0) target bundleno = 1048 (0x418), region = 56  ;;  %s1577_s6 = sand.u32 (!%p1510_p0), 1, %s1296_s15  }
  0x44   : > { %s927_s4 = sshll.u32 (!%p1510_p0), %s1577_s6, 4  ;;  %s369_s19 = scalar_lea.sflag (!%p1510_p0), [#allocation8], %s1577_s6 }
  0x45   : > { %s1581_s20 = scalar_lea.vmem (!%p1510_p0), [#allocation7], %s927_s4 }
  0x48   : > { %1267 = dma.done.wait (%p1479_p7), %s369_s19, 256  }
  0x49   : > { %1269 = vsyncadd (%p1479_p7), %s369_s19, 4294967040  ;;  %s378_s5 = sand.u32 1, %s1284_s12  }
  0x4a   : > { %s928_s25 = sshll.u32 %s378_s5, 4  ;;  %s379_s8 = scalar_lea.sflag [#allocation11], %s378_s5 }
  0x4b   : > { %s382_s18 = scalar_lea.vmem [#allocation10], %s928_s25 }
  0x4c   : > { %1271 = dma.done.wait (%p1529_p11), %s379_s8, 256  }
  0x4d   : > { %1273 = vsyncadd (%p1529_p11), %s379_s8, 4294967040  ;;  %v424_v0 = vld [vmem:[%s382_s18] sm:$0xff]  ;;  %v425_v1 = vld [vmem:[%s382_s18 + $0x8] sm:$0xff]  ;;  %s1592_s9 = scalar_lea.vmem [#allocation12], %s927_s4  ;;  %p930_p10 = scmp.ne.s32.totalorder %s1304_s17, 0 }
  0x4e   : > { %v426_v2 = vpack.c.bf16 %v425_v1, %v424_v0  ;;  %s1813_s23 = sld [smem:[#allocation27_spill]] (!%p930_p10) }
  0x4f   : > { %430 = sbr.rel (%p930_p10) target bundleno = 224 (0xe0), region = 68  ;;  %s1814_s26 = sld [smem:[#allocation26_spill]] (!%p930_p10) }
  0x54   : > { %v431_v3 = vld [vmem:[%s1581_s20] sm:$0xff]  ;;  %v432_v4 = vld [vmem:[%s1581_s20 + $0x8] sm:$0xff]  ;;  %v1333_v6 = vmov 0   ;;  %vm441_vm0 = vcmask 130048   ;;  %v1334_v9 = vmov -inf   ;;  %v1335_v10 = vmov 0.0  }
  0x55   : > { %v433_v5 = vpack.c.bf16 %v432_v4, %v431_v3  ;;  %1087 = vset.pattern.permute.xlu0 %v1333_v6  ;;  %v435_v7 = vld [vmem:[%s1813_s23] sm:$0x3]  ;;  %460 = vst [vmem:[#allocation3] sm:$0x1] %v1334_v9 }
  0x56   : > { %438 = vperm.xlu0 %1087, %v435_v7   ;;  %v434_v8 = vld [vmem:[%s1814_s26] sm:$0x1]  ;;  %461 = vst [vmem:[#allocation4] sm:$0x1] %v1335_v10 }
  0x57   : > { %452 = vmatpush.bf16.msra.mxu0 %v433_v5  ;;  %462 = vst [vmem:[#allocation5] sm:$0xff] %v1335_v10 }
  0x58   : > { %463 = vst [vmem:[#allocation5 + $0x8] sm:$0xff] %v1335_v10 }
  0x5a   : > { %931 = vmatmul.msk.bf16.vlgmr.msra.gmra.mxu0 %vm441_vm0, %v434_v8 }
  0xc8   : > { %v439_v11 = vpop.permute.xlu0 %438 }
  0xd7   : > { %v454_v12 = vpop.f32.mrf.mxu0 }
  0xd8   : > { %v455_v13 = vadd.f32 %v454_v12, %v439_v11 }
  0xda   : > { %v458_v14 = vpack.c.bf16 %v455_v13, %v455_v13 }
  0xdc   : > { %459 = vst [vmem:[#allocation2] sm:$0x1] %v458_v14 }
  0xdf   : > { %v456_v15 = vpop.f32.mrf.mxu0 }
  0xe0 PF: > { %482 = vmatpush.bf16.msra.mxu2 %v426_v2  ;;  %s1815_s28 = sld [smem:[#allocation28_spill]]  ;;  %vm471_vm1 = vcmask 130048   ;;  %v1336_v18 = vmov 0   ;;  %vm531_vm2 = vcmask 1040384   ;;  %vm506_vm3 = vcmask 15360   ;;  %p946_p7 = scmp.ne.s32.totalorder %s1304_s17, 1 }
  0xe1   : > { %s1816_s4 = sld [smem:[#allocation29_spill]]  ;;  %1088 = vset.pattern.permute.xlu0 %v1336_v18  ;;  %1089 = vset.pattern.permute.xlu1 %v1336_v18  ;;  %v1649_v9 = vld [vmem:[#allocation3] sm:$0x1] }
  0xe2   : > { %s1817_s25 = sld [smem:[#allocation30_spill]] }
  0xe3   : > { %v489_v19 = vld [vmem:[#allocation2] sm:$0x1]  ;;  %s1818_s29 = sld [smem:[#allocation31_spill]] }
  0xe4   : > { %716 = vmatpush.bf16.msrb.mxu2 %v426_v2  ;;  %v533_v20 = vsel %vm531_vm2, %v489_v19, 0  ;;  %s770_s10 = sld [smem:[#allocation6]] (!%p946_p7) }
  0xe5   : > { %542 = vmatpush.bf16.msra.mxu0 %v533_v20  ;;  %953 = vmatpush.bf16.msra.mxu1 %v533_v20 }
  0xe6   : > { %v464_v16 = vld [vmem:[%s1815_s28] sm:$0x1] }
  0xe7   : > { %v465_v17 = vld [vmem:[%s1816_s4] sm:$0x3]  ;;  %932 = vmatmul.msk.bf16.vlgmr.msra.gmra.mxu2 %vm471_vm1, %v464_v16 }
  0xe8   : > { %468 = vperm.xlu0 %1088, %v465_v17   ;;  %v952_v34 = vld [vmem:[%s1817_s25] sm:$0xff] }
  0xe9   : > { %v689_v35 = vld [vmem:[%s1818_s29] sm:$0xff]  ;;  %v690_v36 = vld [vmem:[%s1818_s29 + $0x8] sm:$0xff] }
  0xea   : > { %693 = vperm.xlu1 %1089, %v689_v35  }
  0xf2   : > { %698 = vperm.xlu1 %1089, %v690_v36  }
  0xf7   : > { %945 = vmatmul.msk.bf16.vlgmr.msrb.gmra.mxu2 %vm471_vm1, %v952_v34 }
 0x15a   : > { %v469_v21 = vpop.permute.xlu0 %468 }
 0x16a   : > { %v484_v22 = vpop.f32.mrf.mxu2 }
 0x16b   : > { %v485_v23 = vadd.f32 %v484_v22, %v469_v21 }
 0x16d   : > { %v488_v24 = vpack.c.bf16 %v485_v23, %v485_v23 }
 0x16f   : > { %490 = vxpose.xlu0.c.b16.start.end [1/1] (short) %v488_v24, 128 }
 0x172   : > { %v486_v25 = vpop.f32.mrf.mxu2 }
 0x21b   : > { %v498_v26 = vpop.trf.xlu0 }
 0x21c   : > { %933 = vmatmul.msk.bf16.vlgmr.msra.gmra.mxu0 %vm506_vm3, %v498_v26 }
 0x22b   : > { %v499_v27 = vpop.trf.xlu0 }
 0x22c   : > { %934 = vmatmul.msk.bf16.gmra.mxu0 %vm506_vm3, %v499_v27 }
 0x23b   : > { %v500_v28 = vpop.trf.xlu0 }
 0x23c   : > { %935 = vmatmul.msk.bf16.gmra.mxu0 %vm506_vm3, %v500_v28 }
 0x24b   : > { %v501_v29 = vpop.trf.xlu0 }
 0x24c   : > { %936 = vmatmul.msk.bf16.gmra.mxu0 %vm506_vm3, %v501_v29 }
 0x25b   : > { %v502_v30 = vpop.trf.xlu0 }
 0x25c   : > { %937 = vmatmul.msk.bf16.vlgmr.msra.gmra.mxu1 %vm506_vm3, %v502_v30 }
 0x26b   : > { %v503_v31 = vpop.trf.xlu0 }
 0x26c   : > { %938 = vmatmul.msk.bf16.gmra.mxu1 %vm506_vm3, %v503_v31 }
 0x27b   : > { %v504_v32 = vpop.trf.xlu0 }
 0x27c   : > { %939 = vmatmul.msk.bf16.gmra.mxu1 %vm506_vm3, %v504_v32 }
 0x28b   : > { %v505_v33 = vpop.trf.xlu0 }
 0x28c   : > { %940 = vmatmul.msk.bf16.gmra.mxu1 %vm506_vm3, %v505_v33 }
 0x299   : > { %v544_v37 = vpop.f32.mrf.mxu0 }
 0x2a1   : > { %v546_v38 = vpop.f32.mrf.mxu0 }
 0x2a9   : > { %v549_v39 = vpop.f32.mrf.mxu0 }
 0x2b1   : > { %v551_v42 = vpop.f32.mrf.mxu0 }
 0x2b9   : > { %v554_v44 = vpop.f32.mrf.mxu0 }
 0x2ba   : > { %v585_v53 = vmax.f32 %v544_v37, %v554_v44 }
 0x2c1   : > { %v556_v46 = vpop.f32.mrf.mxu0 }
 0x2c2   : > { %v586_v52 = vmax.f32 %v546_v38, %v556_v46 }
 0x2c9   : > { %v559_v48 = vpop.f32.mrf.mxu0 }
 0x2ca   : > { %v587_v54 = vmax.f32 %v549_v39, %v559_v48 }
 0x2d1   : > { %v561_v51 = vpop.f32.mrf.mxu0 }
 0x2d2   : > { %v588_v55 = vmax.f32 %v551_v42, %v561_v51 }
 0x2d9   : > { %v1628_v40 = vpop.f32.mrf.mxu1 }
 0x2da   : > { %v589_v57 = vmax.f32 %v585_v53, %v1628_v40 }
 0x2e1   : > { %v1630_v41 = vpop.f32.mrf.mxu1 }
 0x2e2   : > { %v590_v56 = vmax.f32 %v586_v52, %v1630_v41 }
 0x2e9   : > { %v1632_v43 = vpop.f32.mrf.mxu1 }
 0x2ea   : > { %v591_v58 = vmax.f32 %v587_v54, %v1632_v43 }
 0x2f1   : > { %v1634_v45 = vpop.f32.mrf.mxu1 }
 0x2f2   : > { %v592_v59 = vmax.f32 %v588_v55, %v1634_v45 }
 0x2f9   : > { %v1636_v47 = vpop.f32.mrf.mxu1 }
 0x2fa   : > { %v593_v62 = vmax.f32 %v589_v57, %v1636_v47 }
 0x301   : > { %v1638_v49 = vpop.f32.mrf.mxu1 }
 0x302   : > { %v594_v60 = vmax.f32 %v590_v56, %v1638_v49 }
 0x304   : > { %v597_v1 = vmax.f32 %v593_v62, %v594_v60 }
 0x309   : > { %v1640_v50 = vpop.f32.mrf.mxu1 }
 0x30a   : > { %v595_v63 = vmax.f32 %v591_v58, %v1640_v50 }
 0x311   : > { %v581_v61 = vpop.f32.mrf.mxu1 }
 0x312   : > { %v596_v0 = vmax.f32 %v592_v59, %v581_v61 }
 0x314   : > { %v598_v2 = vmax.f32 %v595_v63, %v596_v0 }
 0x316   : > { %v599_v3 = vmax.f32 %v597_v1, %v598_v2 }
 0x318   : > { %v600_v4 = vrot.slane %v599_v3, 4 }
 0x31a   : > { %v601_v5 = vmax.f32 %v599_v3, %v600_v4 }
 0x31c   : > { %v602_v6 = vrot.slane %v601_v5, 2 }
 0x31e   : > { %v603_v7 = vmax.f32 %v601_v5, %v602_v6 }
 0x320   : > { %v604_v8 = vrot.slane %v603_v7, 1 }
 0x322   : > { %v605_v10 = vmax.f32 %v603_v7, %v604_v8 }
 0x324   : > { %v1652_v11 = vmax.f32 %v1649_v9, %v605_v10 }
 0x326   : > { %v611_v12 = vperm.slane %v1652_v11, 0  ;;  %686 = vst [vmem:[#allocation3] sm:$0x1] %v1652_v11 }
 0x328   : > { %v613_v13 = vsub.f32 %v544_v37, %v611_v12  ;;  %v614_v14 = vsub.f32 %v546_v38, %v611_v12  ;;  %v615_v15 = vsub.f32 %v549_v39, %v611_v12  ;;  %v616_v16 = vsub.f32 %v551_v42, %v611_v12 }
 0x329   : > { %v617_v19 = vsub.f32 %v554_v44, %v611_v12  ;;  %v618_v22 = vsub.f32 %v556_v46, %v611_v12  ;;  %v628_v23 = vsub.f32 %v581_v61, %v611_v12  ;;  %v619_v24 = vsub.f32 %v559_v48, %v611_v12 }
 0x32a   : > { %v629_v17 = vmul.f32 1.442695, %v613_v13  ;;  %v631_v18 = vmul.f32 1.442695, %v614_v14  ;;  %v633_v20 = vmul.f32 1.442695, %v615_v15  ;;  %v620_v26 = vsub.f32 %v561_v51, %v611_v12 }
 0x32b   : > { %v635_v21 = vmul.f32 1.442695, %v616_v16  ;;  %v637_v25 = vmul.f32 1.442695, %v617_v19  ;;  %v621_v27 = vsub.f32 %v1628_v40, %v611_v12  ;;  %v639_v28 = vmul.f32 1.442695, %v618_v22  ;;  %v694_v19 = vpop.permute.xlu1 %693 }
 0x32c   : > { %1090 = vpow2.f32 %v629_v17  ;;  %v659_v30 = vmul.f32 1.442695, %v628_v23  ;;  %v627_v31 = vsub.f32 %v1640_v50, %v611_v12  ;;  %v625_v33 = vsub.f32 %v1636_v47, %v611_v12 }
 0x32d   : > { %1092 = vpow2.f32 %v631_v18  ;;  %v641_v34 = vmul.f32 1.442695, %v619_v24  ;;  %v626_v36 = vsub.f32 %v1638_v49, %v611_v12  ;;  %v643_v37 = vmul.f32 1.442695, %v620_v26 }
 0x32e   : > { %1094 = vpow2.f32 %v633_v20  ;;  %v622_v40 = vsub.f32 %v1630_v41, %v611_v12  ;;  %v645_v42 = vmul.f32 1.442695, %v621_v27  ;;  %v657_v44 = vmul.f32 1.442695, %v627_v31  ;;  %v718_v20 = vpop.f32.mrf.mxu2 }
 0x32f   : > { %1096 = vpow2.f32 %v635_v21  ;;  %v623_v47 = vsub.f32 %v1632_v43, %v611_v12  ;;  %v653_v48 = vmul.f32 1.442695, %v625_v33  ;;  %v624_v50 = vsub.f32 %v1634_v45, %v611_v12 }
 0x330   : > { %1098 = vpow2.f32 %v637_v25  ;;  %v655_v51 = vmul.f32 1.442695, %v626_v36  ;;  %v647_v53 = vmul.f32 1.442695, %v622_v40  ;;  %v607_v15 = vsub.f32 %v1649_v9, %v1652_v11  ;;  %v661_v11 = vld [vmem:[#allocation4] sm:$0x1] }
 0x331   : > { %1100 = vpow2.f32 %v639_v28  ;;  %v649_v56 = vmul.f32 1.442695, %v623_v47  ;;  %v651_v57 = vmul.f32 1.442695, %v624_v50  ;;  %v719_v36 = vadd.f32 %v718_v20, %v694_v19  ;;  %v724_v47 = vld [vmem:[#allocation5] sm:$0xff] }
 0x332   : > { %v1657_v29 = vpop.eup %1090  ;;  %1102 = vpow2.f32 %v659_v30  ;;  %v608_v21 = vmul.f32 1.442695, %v607_v15 }
 0x333   : > { %v1660_v32 = vpop.eup %1092  ;;  %1104 = vpow2.f32 %v641_v34  ;;  %v699_v31 = vpop.permute.xlu1 %698 }
 0x334   : > { %v1663_v35 = vpop.eup %1094  ;;  %v663_v38 = vadd.f32 %v1660_v32, %v1657_v29  ;;  %1106 = vpow2.f32 %v643_v37  ;;  %v731_v40 = vpack.c.bf16 %v1660_v32, %v1657_v29 }
 0x335   : > { %v1668_v39 = vpop.eup %1096  ;;  %1108 = vpow2.f32 %v645_v42 }
 0x336   : > { %v664_v46 = vadd.f32 %v1663_v35, %v663_v38  ;;  %v732_v49 = vpack.c.bf16 %v1668_v39, %v1663_v35  ;;  %v1099_v41 = vpop.eup %1098  ;;  %1110 = vpow2.f32 %v657_v44  ;;  %v720_v9 = vpop.f32.mrf.mxu2  ;;  %v725_v35 = vld [vmem:[#allocation5 + $0x8] sm:$0xff] }
 0x337   : > { %v1101_v55 = vpop.eup %1100  ;;  %1112 = vpow2.f32 %v653_v48  ;;  %v721_v37 = vadd.f32 %v720_v9, %v699_v31 }
 0x338   : > { %v665_v52 = vadd.f32 %v1668_v39, %v664_v46  ;;  %v1103_v43 = vpop.eup %1102  ;;  %1114 = vpow2.f32 %v655_v51  ;;  %v733_v26 = vpack.c.bf16 %v1101_v55, %v1099_v41 }
 0x339   : > { %v1105_v59 = vpop.eup %1104  ;;  %1116 = vpow2.f32 %v647_v53  ;;  %v723_v44 = vpack.c.bf16 %v721_v37, %v719_v36 }
 0x33a   : > { %v666_v54 = vadd.f32 %v1099_v41, %v665_v52  ;;  %v1107_v60 = vpop.eup %1106  ;;  %1118 = vpow2.f32 %v649_v56 }
 0x33b   : > { %v1109_v61 = vpop.eup %1108  ;;  %1120 = vpow2.f32 %v651_v57  ;;  %v734_v23 = vpack.c.bf16 %v1107_v60, %v1105_v59 }
 0x33c   : > { %v667_v58 = vadd.f32 %v1101_v55, %v666_v54  ;;  %v1111_v62 = vpop.eup %1110  ;;  %1122 = vpow2.f32 %v608_v21 }
 0x33d   : > { %v1113_v0 = vpop.eup %1112  ;;  %v738_v1 = vpack.c.bf16 %v1103_v43, %v1111_v62 }
 0x33e   : > { %v668_v45 = vadd.f32 %v1105_v59, %v667_v58  ;;  %v1115_v2 = vpop.eup %1114 }
 0x33f   : > { %v1117_v4 = vpop.eup %1116  ;;  %739 = vmatpush.bf16.msra.mxu3 %v738_v1  ;;  %v737_v7 = vpack.c.bf16 %v1115_v2, %v1113_v0 }
 0x340   : > { %v669_v63 = vadd.f32 %v1107_v60, %v668_v45  ;;  %v1119_v6 = vpop.eup %1118  ;;  %v735_v17 = vpack.c.bf16 %v1117_v4, %v1109_v61 }
 0x341   : > { %v1121_v8 = vpop.eup %1120 }
 0x342   : > { %v670_v3 = vadd.f32 %v1109_v61, %v669_v63  ;;  %v736_v13 = vpack.c.bf16 %v1121_v8, %v1119_v6  ;;  %v1123_v30 = vpop.eup %1122 }
 0x343   : > { %740 = vmatpush.bf16.msra.mxu3 %v737_v7  ;;  %v662_v38 = vmul.f32 %v1123_v30, %v661_v11  ;;  %v727_v46 = vperm.slane %v1123_v30, 0 }
 0x344   : > { %v671_v5 = vadd.f32 %v1117_v4, %v670_v3 }
 0x345   : > { %v729_v48 = vmul.f32 %v727_v46, %v724_v47  ;;  %v730_v39 = vmul.f32 %v727_v46, %v725_v35 }
 0x346   : > { %v672_v10 = vadd.f32 %v1119_v6, %v671_v5 }
 0x347   : > { %741 = vmatpush.bf16.msra.mxu3 %v736_v13 }
 0x348   : > { %v673_v12 = vadd.f32 %v1121_v8, %v672_v10 }
 0x34a   : > { %v674_v14 = vadd.f32 %v1113_v0, %v673_v12 }
 0x34b   : > { %742 = vmatpush.bf16.msra.mxu3 %v735_v17 }
 0x34c   : > { %v675_v16 = vadd.f32 %v1115_v2, %v674_v14 }
 0x34e   : > { %v676_v18 = vadd.f32 %v1111_v62, %v675_v16 }
 0x34f   : > { %743 = vmatpush.bf16.msra.mxu3 %v734_v23 }
 0x350   : > { %v677_v22 = vadd.f32 %v1103_v43, %v676_v18 }
 0x352   : > { %v678_v24 = vrot.slane %v677_v22, 4 }
 0x353   : > { %744 = vmatpush.bf16.msra.mxu3 %v733_v26 }
 0x354   : > { %v679_v25 = vadd.f32 %v678_v24, %v677_v22 }
 0x356   : > { %v680_v27 = vrot.slane %v679_v25, 2 }
 0x357   : > { %745 = vmatpush.bf16.msra.mxu3 %v732_v49 }
 0x358   : > { %v681_v28 = vadd.f32 %v680_v27, %v679_v25 }
 0x35a   : > { %v682_v33 = vrot.slane %v681_v28, 1 }
 0x35b   : > { %746 = vmatpush.bf16.msra.mxu3 %v731_v40 }
 0x35c   : > { %v683_v34 = vadd.f32 %v682_v33, %v681_v28 }
 0x35e   : > { %v684_v42 = vadd.f32 %v683_v34, %v662_v38  ;;  %747 = vmatmul.bf16.vlgmr.msra.gmra.mxu3 %v723_v44 }
 0x360   : > { %685 = vst [vmem:[#allocation4] sm:$0x1] %v684_v42 }
 0x3e1   : > { %v748_v50 = vpop.f32.mrf.mxu3 }
 0x3e2   : > { %v753_v51 = vadd.f32 %v748_v50, %v729_v48 }
 0x3e4   : > { %755 = vst [vmem:[#allocation5] sm:$0xff] %v753_v51 }
 0x3e8   : > { %760 = sbr.rel (%p946_p7) target bundleno = 1023 (0x3ff), region = 72 }
 0x3e9   : > { %v750_v49 = vpop.f32.mrf.mxu3 }
 0x3ea   : > { %v754_v52 = vadd.f32 %v750_v49, %v730_v39 }
 0x3ec   : > { %756 = vst [vmem:[#allocation5 + $0x8] sm:$0xff] %v754_v52 }
 0x3ed   : > { %v763_v29 = vld [vmem:[#allocation4] sm:$0x1]  ;;  %v761_v41 = vld [vmem:[#allocation5] sm:$0xff]  ;;  %v771_v55 = vstv %s770_s10 }
 0x3ee   : > { %1124 = vrcp.f32 %v763_v29  ;;  %v774_v57 = vld [vmem:[%s1581_s20] sm:$0xff]  ;;  %v775_v58 = vld [vmem:[%s1581_s20 + $0x8] sm:$0xff] }
 0x3f3   : > { %v762_v53 = vld [vmem:[#allocation5 + $0x8] sm:$0xff] }
 0x3f4   : > { %v1125_v32 = vpop.eup %1124 }
 0x3f5   : > { %v766_v54 = vperm.slane %v1125_v32, 0 }
 0x3f7   : > { %v768_v56 = vmul.f32 %v766_v54, %v761_v41  ;;  %v769_v43 = vmul.f32 %v766_v54, %v762_v53 }
 0x3f9   : > { %v772_v59 = vmul.f32 %v771_v55, %v768_v56  ;;  %v773_v60 = vmul.f32 %v771_v55, %v769_v43 }
 0x3fb   : > { %v776_v45 = vadd.f32 %v774_v57, %v772_v59  ;;  %v777_v61 = vadd.f32 %v775_v58, %v773_v60 }
 0x3fd   : > { %778 = vst [vmem:[%s1592_s9] sm:$0xff] %v776_v45 }
 0x3fe   : > { %779 = vst [vmem:[%s1592_s9 + $0x8] sm:$0xff] %v777_v61 }
 0x3ff PF: > { %s1819_s17 = sld [smem:[#allocation18_spill]]  ;;  %s794_s28 = sshll.u32 %s1592_s9, 4  ;;  %s795_s28 = int_to_ptr.vmem [resolvable:$true] %s794_s28 }
 0x400   : > { %s1820_s27 = sld [smem:[#allocation17_spill]]  ;;  %s781_s8 = scalar_lea.sflag [#allocation9], %s1577_s6 }
 0x401   : > { %s1822_s20 = sld [smem:[#allocation32_spill]] }
 0x405   : > { %s948_s14 = sshll.u32 %s1819_s17, 2 }
 0x406   : > { %s791_s7 = sadd.s32 %s1820_s27, %s948_s14 }
 0x407   : > { %s949_s0 = sshll.u32 %s791_s7, 3  ;;  %s1823_s5 = smov %s1822_s20 }
 0x408   : > { %s793_s19 = scalar_lea.hbm %s1822_s20, %s949_s0  ;;  %s1206_s9 = scalar_lea.hbm %s1823_s5, 64 }
 0x409   : > { %s796_s25 = sshll.u32 %s793_s19, 4  ;;  %s797_s25 = int_to_ptr.hbm [resolvable:$true] %s796_s25 }
 0x40a   : > { %s1200_s18 = sshra.s32 %s797_s25, 4  ;;  %s1201_s18 = int_to_ptr.hbm [resolvable:$true] %s1200_s18 }
 0x40b   : > { %s1202_s30 = scalar_lea.hbm %s1201_s18, 16  ;;  %p1207_p6 = scmp.lt.s32.totalorder %s1201_s18, %s1823_s5 }
 0x40c   : > { %p1203_p0 = scmp.ne.s32.totalorder %s1201_s18, %s1202_s30  ;;  %p1208_p11 = scmp.lt.s32.totalorder %s1206_s9, %s1202_s30 }
 0x40e   : > { %p1204_p4 = pnand %p1203_p0, %p1483_p8  ;;  %p1209_p12 = por %p1208_p11, %p1207_p6 }
 0x410   : > { %p1205_p5 = pneg %p1204_p4 }
 0x412   : > { %p1210_p3 = pnand %p1209_p12, %p1205_p5 }
 0x414   : > { %1213 = shalt.err (!%p1210_p3)
}
 0x415   : > { %s1337_s6 = smov 128   ;;  %s1338_s14 = smov 256  }
 0x416   : > { %s1339_s7 = smov 8  }
 0x417   : > { %958 = dma.vmem_to_hbm [thread:$0]  (%p1483_p8), %s795_s28, 256, %s797_s25, %s781_s8, %s1337_s6, %s1338_s14, %s1339_s7  }
 0x418 PF: > { %s1824_s0 = sld [smem:[#allocation16_spill]]  ;;  %p972_p1 = scmp.ge.s32.totalorder %s1328_s22, 2 }
 0x41a   : > { %p968_p13 = pnand %p972_p1, %p1487_p9 }
 0x41c   : > { %p969_p2 = pneg %p968_p13 }
 0x41e   : > { %s811_s4 = sand.u32 1, %s1824_s0  }
 0x41f   : > { %s812_s20 = scalar_lea.sflag [#allocation9], %s811_s4 }
 0x420   : > { %1275 = dma.done.wait (%p969_p2), %s812_s20, 256  }
 0x421   : > { %1277 = vsyncadd (%p969_p2), %s812_s20, 4294967040  ;;  %s29_s22 = sadd.s32 1, %s1328_s22   ;;  %s1827_s17 = sld [smem:[#allocation19_spill]] }
 0x422   : > { %p1711_p10 = scmp.ge.s32.totalorder %s29_s22, 10   ;;  %s1828_s8 = sld [smem:[#allocation20_spill]] }
 0x423   : > { %s1829_s26 = sld [smem:[#allocation23_spill]]  ;;  %s1831_s28 = smov %s1851_s11 }
 0x424   : > { %s1830_s20 = sld [smem:[#allocation24_spill]]  ;;  %s1833_s11 = smov %s1284_s12 }
 0x425   : > { %s1834_s12 = smov %s1288_s13  ;;  %s1835_s13 = smov %s1565_s3 }
 0x426   : > { %s1836_s14 = smov %s1296_s15  ;;  %s1837_s15 = smov %s1300_s16 }
 0x427   : > { %s1838_s16 = smov %s1560_s2  ;;  %s1839_s18 = smov %s1324_s21 }
 0x428   : > { %s1841_s21 = smov %s1831_s28  ;;  %28 = sbr.rel (!%p1711_p10) target bundleno = 22 (0x16), region = 122 }
 0x429   : > { %s1840_s19 = smov %s1829_s26 }
 0x42d   :  { %818 = vsyncpa [#allocation8], 1 }
 0x42e   :  { %820 = vsyncpa [#allocation8 + $0x1], 1 }
 0x42f   :  { %821 = vsyncpa [#allocation11], 1 }
 0x430   :  { %823 = vsyncpa [#allocation11 + $0x1], 1 }
 0x431   :  { %824 = vsyncpa [#allocation9], 1 }
 0x432   :  { %826 = vsyncpa [#allocation9 + $0x1], 1 }

</bundles_post_ra>
